<compile_context>
chip_gen: v6e
topology: v6e:2x2x1
jax: 0.10.0
libtpu: 0.0.40
codegen_flags: <defaults>
</compile_context>

<pallas_src>
import functools

import jax
import jax.numpy as jnp
from jax import lax
from jax.experimental import pallas as pl
from jax.experimental.pallas import tpu as pltpu


# ---------------------------------------------------------------------------
# helpers
# ---------------------------------------------------------------------------
def _tap_offset(t, wpix):
    kh, kw = divmod(t, 3)
    return (kh - 1) * wpix + (kw - 1)


def _tap_masks(hpix, wpix):
    """(9, H*W) f32 masks: 1 where tap t reads a valid (non-padded) pixel."""
    hw = hpix * wpix
    r = jnp.arange(hw, dtype=jnp.int32) // wpix
    c = jnp.arange(hw, dtype=jnp.int32) % wpix
    rows = []
    for t in range(9):
        kh, kw = divmod(t, 3)
        dh, dw = kh - 1, kw - 1
        valid = ((r + dh >= 0) & (r + dh < hpix) &
                 (c + dw >= 0) & (c + dw < wpix))
        rows.append(valid)
    return jnp.stack(rows, axis=0).astype(jnp.float32)


def _make_kernels(ipb, cin, cout, hpix, wpix):
    hw = hpix * wpix

    def stage_taps(x_ref, m_ref, stage_ref):
        """Stage the 9 shifted+masked taps of all `ipb` images.

        x_ref:     (ipb, Cin, H*W) activations.
        m_ref:     (9, H*W) f32 validity masks.
        stage_ref: (ipb, 9*Cin, H*W) f32 VMEM scratch; rows [t*Cin,(t+1)*Cin)
                   hold tap t, matching the (Cout, 9*Cin) weight layout.
        The whole scratch is rewritten every grid step (no init needed, safe
        under "parallel" megacore sharding).
        """
        xb = x_ref[...].astype(jnp.float32)            # (ipb, Cin, HW)
        m = m_ref[...]                                 # (9, HW)  (loaded once)
        for t in range(9):
            off = _tap_offset(t, wpix)
            # result[p] = x[p + off]; wrapped positions are exactly the ones
            # the boundary mask zeroes, so a cyclic roll is sufficient.
            xs = pltpu.roll(xb, (-off) % hw, axis=2) if off != 0 else xb
            if t != 4:                                 # center tap never wraps
                xs = xs * m[t:t + 1, :]
            stage_ref[:, t * cin:(t + 1) * cin, :] = xs

    # ----- pass 1: per-image partial BN statistics (sum, sum of squares) ----
    def stats_kernel(x_ref, w_ref, m_ref, sum_ref, ssq_ref, stage_ref):
        stage_taps(x_ref, m_ref, stage_ref)
        w = w_ref[...]                                 # (Cout, 9*Cin), hoisted
        for j in range(ipb):                           # ipb is capped at 8
            conv = jnp.dot(w, stage_ref[j],
                           preferred_element_type=jnp.float32)   # (Cout, HW)
            sum_ref[j] = jnp.sum(conv, axis=1, keepdims=True)     # (Cout, 1)
            ssq_ref[j] = jnp.sum(conv * conv, axis=1, keepdims=True)

    # ----- pass 2: recompute conv + fused scale/shift (BN or bias) + ReLU ---
    def fwd_kernel(x_ref, w_ref, m_ref, scale_ref, shift_ref, o_ref, stage_ref):
        stage_taps(x_ref, m_ref, stage_ref)
        w = w_ref[...]
        scale = scale_ref[...]                         # (Cout, 1)
        shift = shift_ref[...]
        for j in range(ipb):
            conv = jnp.dot(w, stage_ref[j],
                           preferred_element_type=jnp.float32)   # (Cout, HW)
            o_ref[j] = jnp.maximum(conv * scale + shift, 0.0).astype(o_ref.dtype)

    return stats_kernel, fwd_kernel


# ---------------------------------------------------------------------------
# wrapper
# ---------------------------------------------------------------------------
@functools.partial(jax.jit, static_argnames=("use_bn", "out_dtype"))
def conv2d_bn_relu(x_nchw, weight_oihw, bias, *, use_bn=True, eps=1e-5,
                   out_dtype=jnp.bfloat16):
    n, cin, hpix, wpix = x_nchw.shape
    cout = weight_oihw.shape[0]
    hw = hpix * wpix
    out_dtype = jnp.dtype(x_nchw.dtype if out_dtype is None else out_dtype)

    # Free metadata reshape; no pad/cast HBM round trip.
    x_flat = x_nchw.reshape(n, cin, hw)
    # (Cout, Cin, kh, kw) -> (Cout, kh, kw, Cin) -> (Cout, 9*Cin):
    # column t*Cin + ci matches stage row t*Cin + ci (t = kh*3 + kw).
    w_flat = jnp.transpose(weight_oihw, (0, 2, 3, 1)).reshape(cout, 9 * cin)
    w_flat = w_flat.astype(jnp.float32)
    masks = _tap_masks(hpix, wpix)

    # ---- block sizing: `ipb` whole images per grid step --------------------
    try:
        vmem_cap = int(getattr(pltpu.get_tpu_info(), "vmem_capacity_bytes",
                               64 * 1024 * 1024))
    except Exception:  # pragma: no cover - defensive fallback
        vmem_cap = 64 * 1024 * 1024
    # 64 MiB scoped limit on the 128 MiB parts (v5e/v6e), 32 MiB on v7x.
    vmem_limit = int(min(vmem_cap // 2, 64 * 1024 * 1024))
    blk_budget = int(min(vmem_limit // 8, 6 * 1024 * 1024))
    per_img = (2 * cin * hw * x_nchw.dtype.itemsize        # x block, dbl-buffered
               + 2 * cout * hw * out_dtype.itemsize        # out block, dbl-buffered
               + 9 * cin * hw * 4)                         # f32 staging scratch
    ipb = int(max(1, min(blk_budget // max(per_img, 1),
                         n,
                         max(1, pl.cdiv(n, 4)),            # keep >= 4 grid steps
                         8)))                              # bound Python unroll
    grid = (pl.cdiv(n, ipb),)                              # ragged tail OK
    stats_kernel, fwd_kernel = _make_kernels(ipb, cin, cout, hpix, wpix)

    x_spec = pl.BlockSpec((ipb, cin, hw), lambda i: (i, 0, 0))
    w_spec = pl.BlockSpec((cout, 9 * cin), lambda i: (0, 0))
    m_spec = pl.BlockSpec((9, hw), lambda i: (0, 0))
    vec_spec = pl.BlockSpec((cout, 1), lambda i: (0, 0))
    stage = pltpu.VMEM((ipb, 9 * cin, hw), jnp.float32)
    cparams = pltpu.CompilerParams(dimension_semantics=("parallel",),
                                   vmem_limit_bytes=vmem_limit)

    if use_bn:
        psum, pssq = pl.pallas_call(
            stats_kernel,
            out_shape=(jax.ShapeDtypeStruct((n, cout, 1), jnp.float32),
                       jax.ShapeDtypeStruct((n, cout, 1), jnp.float32)),
            grid_spec=pltpu.PrefetchScalarGridSpec(
                num_scalar_prefetch=0, grid=grid,
                in_specs=[x_spec, w_spec, m_spec],
                out_specs=(pl.BlockSpec((ipb, cout, 1), lambda i: (i, 0, 0)),
                           pl.BlockSpec((ipb, cout, 1), lambda i: (i, 0, 0))),
                scratch_shapes=[stage]),
            compiler_params=cparams,
        )(x_flat, w_flat, masks)

        count = float(n * hw)
        mean = jnp.sum(psum, axis=0) / count                   # (Cout, 1)
        var = jnp.sum(pssq, axis=0) / count - mean * mean      # biased batch var
        invstd = lax.rsqrt(var + eps)
        scale = invstd
        # affine=False, train-mode batch stats: the conv bias cancels exactly.
        # (Do NOT reuse this shortcut for eval-mode or affine=True BN.)
        shift = -mean * invstd
    else:
        scale = jnp.ones((cout, 1), jnp.float32)
        shift = bias.reshape(cout, 1).astype(jnp.float32)

    y = pl.pallas_call(
        fwd_kernel,
        out_shape=jax.ShapeDtypeStruct((n, cout, hw), out_dtype),
        grid_spec=pltpu.PrefetchScalarGridSpec(
            num_scalar_prefetch=0, grid=grid,
            in_specs=[x_spec, w_spec, m_spec, vec_spec, vec_spec],
            out_specs=pl.BlockSpec((ipb, cout, hw), lambda i: (i, 0, 0)),
            scratch_shapes=[stage]),
        compiler_params=cparams,
    )(x_flat, w_flat, masks, scale, shift)

    # (N, Cout, H*W) is already channel-major: free reshape to NCHW.
    return y.reshape(n, cout, hpix, wpix)


# ---------------------------------------------------------------------------
# Pure-JAX reference (same forward semantics, f32).
# ---------------------------------------------------------------------------
def reference(x_nchw, weight_oihw, bias, use_bn=True, eps=1e-5):
    y = lax.conv_general_dilated(
        x_nchw.astype(jnp.float32), weight_oihw.astype(jnp.float32),
        window_strides=(1, 1), padding=((1, 1), (1, 1)),
        dimension_numbers=("NCHW", "OIHW", "NCHW"),
        precision=lax.Precision.HIGHEST)
    y = y + bias.reshape(1, -1, 1, 1)
    if use_bn:
        mean = jnp.mean(y, axis=(0, 2, 3), keepdims=True)
        var = jnp.mean((y - mean) ** 2, axis=(0, 2, 3), keepdims=True)
        y = (y - mean) * lax.rsqrt(var + eps)
    return jnp.maximum(y, 0.0)


if __name__ == "__main__":
    key = jax.random.PRNGKey(0)
    k_x, k_w, k_b = jax.random.split(key, 3)

    N, Cin, Cout, H, W = 2, 4, 8, 16, 16

    # init_conv2d: weight ~ N(0, std=0.001), bias = 0
    weight = 0.001 * jax.random.normal(k_w, (Cout, Cin, 3, 3), dtype=jnp.float32)
    bias = jnp.zeros((Cout,), dtype=jnp.float32)
    x = jax.random.normal(k_x, (N, Cin, H, W), dtype=jnp.float32)

    # conv -> BN(batch stats, affine=False) -> ReLU
    out = conv2d_bn_relu(x, weight, bias, use_bn=True)
    out = jax.block_until_ready(out)
    ref = reference(x, weight, bias, use_bn=True)
    assert out.shape == (N, Cout, H, W)
    assert out.dtype == jnp.bfloat16          # bf16 output per perf review
    assert jnp.allclose(out.astype(jnp.float32), ref, atol=2e-2, rtol=2e-2), \
        "mismatch vs JAX reference (use_bn=True)"

    # conv(+bias) -> ReLU path (no BN), nonzero bias exercises the shift.
    bias2 = 0.05 * jax.random.normal(k_b, (Cout,), dtype=jnp.float32)
    out2 = jax.block_until_ready(conv2d_bn_relu(x, weight, bias2, use_bn=False))
    ref2 = reference(x, weight, bias2, use_bn=False)
    assert jnp.allclose(out2.astype(jnp.float32), ref2, atol=3e-3, rtol=2e-2), \
        "mismatch vs JAX reference (use_bn=False)"

    print("KERNEL_OK")
</pallas_src>

<mosaic_0001>
module attributes {stable_mosaic.version = 11 : i64} {
  func.func @stats_kernel(%arg0: i32, %arg1: memref<1x4x256xf32, #tpu.memory_space<vmem>>, %arg2: memref<8x36xf32, #tpu.memory_space<vmem>>, %arg3: memref<9x256xf32, #tpu.memory_space<vmem>>, %arg4: memref<1x8x1xf32, #tpu.memory_space<vmem>>, %arg5: memref<1x8x1xf32, #tpu.memory_space<vmem>>, %arg6: memref<1x36x256xf32, #tpu.memory_space<vmem>>) attributes {dimension_semantics = [#tpu.dimension_semantics<parallel>], iteration_bounds = array<i64: 2>, scalar_prefetch = 0 : i64, scratch_operands = 1 : i64, tpu.core_type = #tpu.core_type<tc>, window_params = [{transform_indices = @transform_0, window_bounds = array<i64: 1, 4, 256>}, {pipeline_mode = #tpu.pipeline_mode<synchronous>, transform_indices = @transform_1, window_bounds = array<i64: 8, 36>}, {pipeline_mode = #tpu.pipeline_mode<synchronous>, transform_indices = @transform_2, window_bounds = array<i64: 9, 256>}, {transform_indices = @transform_3, window_bounds = array<i64: 1, 8, 1>}, {transform_indices = @transform_4, window_bounds = array<i64: 1, 8, 1>}]} {
    %c0 = arith.constant 0 : index
    %c0_0 = arith.constant 0 : index
    %c0_1 = arith.constant 0 : index
    %0 = vector.load %arg1[%c0, %c0_0, %c0_1] : memref<1x4x256xf32, #tpu.memory_space<vmem>>, vector<1x4x256xf32>
    %c0_2 = arith.constant 0 : index
    %c0_3 = arith.constant 0 : index
    %1 = vector.load %arg3[%c0_2, %c0_3] : memref<9x256xf32, #tpu.memory_space<vmem>>, vector<9x256xf32>
    %c17_i32 = arith.constant 17 : i32
    %2 = tpu.dynamic_rotate %0 by %c17_i32 dim 2 : vector<1x4x256xf32>, i32 -> vector<1x4x256xf32>
    %3 = vector.extract_strided_slice %1 {offsets = [0, 0], sizes = [1, 256], strides = [1, 1]} : vector<9x256xf32> to vector<1x256xf32>
    %4 = vector.shape_cast %3 : vector<1x256xf32> to vector<1x1x256xf32>
    %5 = vector.broadcast %4 : vector<1x1x256xf32> to vector<1x4x256xf32>
    %6 = arith.mulf %2, %5 : vector<1x4x256xf32>
    %c0_4 = arith.constant 0 : index
    %c0_5 = arith.constant 0 : index
    %c0_6 = arith.constant 0 : index
    %7 = vector.load %arg6[%c0_4, %c0_5, %c0_6] : memref<1x36x256xf32, #tpu.memory_space<vmem>>, vector<1x4x256xf32>
    tpu.vector_store %arg6[%c0_4, %c0_5, %c0_6], %6 {strides = array<i32>} : memref<1x36x256xf32, #tpu.memory_space<vmem>>, vector<1x4x256xf32>,
    %c16_i32 = arith.constant 16 : i32
    %8 = tpu.dynamic_rotate %0 by %c16_i32 dim 2 : vector<1x4x256xf32>, i32 -> vector<1x4x256xf32>
    %9 = vector.extract_strided_slice %1 {offsets = [1, 0], sizes = [1, 256], strides = [1, 1]} : vector<9x256xf32> to vector<1x256xf32>
    %10 = vector.shape_cast %9 : vector<1x256xf32> to vector<1x1x256xf32>
    %11 = vector.broadcast %10 : vector<1x1x256xf32> to vector<1x4x256xf32>
    %12 = arith.mulf %8, %11 : vector<1x4x256xf32>
    %c0_7 = arith.constant 0 : index
    %c4 = arith.constant 4 : index
    %c0_8 = arith.constant 0 : index
    %13 = vector.load %arg6[%c0_7, %c4, %c0_8] : memref<1x36x256xf32, #tpu.memory_space<vmem>>, vector<1x4x256xf32>
    tpu.vector_store %arg6[%c0_7, %c4, %c0_8], %12 {strides = array<i32>} : memref<1x36x256xf32, #tpu.memory_space<vmem>>, vector<1x4x256xf32>,
    %c15_i32 = arith.constant 15 : i32
    %14 = tpu.dynamic_rotate %0 by %c15_i32 dim 2 : vector<1x4x256xf32>, i32 -> vector<1x4x256xf32>
    %15 = vector.extract_strided_slice %1 {offsets = [2, 0], sizes = [1, 256], strides = [1, 1]} : vector<9x256xf32> to vector<1x256xf32>
    %16 = vector.shape_cast %15 : vector<1x256xf32> to vector<1x1x256xf32>
    %17 = vector.broadcast %16 : vector<1x1x256xf32> to vector<1x4x256xf32>
    %18 = arith.mulf %14, %17 : vector<1x4x256xf32>
    %c0_9 = arith.constant 0 : index
    %c8 = arith.constant 8 : index
    %c0_10 = arith.constant 0 : index
    %19 = vector.load %arg6[%c0_9, %c8, %c0_10] : memref<1x36x256xf32, #tpu.memory_space<vmem>>, vector<1x4x256xf32>
    tpu.vector_store %arg6[%c0_9, %c8, %c0_10], %18 {strides = array<i32>} : memref<1x36x256xf32, #tpu.memory_space<vmem>>, vector<1x4x256xf32>,
    %c1_i32 = arith.constant 1 : i32
    %20 = tpu.dynamic_rotate %0 by %c1_i32 dim 2 : vector<1x4x256xf32>, i32 -> vector<1x4x256xf32>
    %21 = vector.extract_strided_slice %1 {offsets = [3, 0], sizes = [1, 256], strides = [1, 1]} : vector<9x256xf32> to vector<1x256xf32>
    %22 = vector.shape_cast %21 : vector<1x256xf32> to vector<1x1x256xf32>
    %23 = vector.broadcast %22 : vector<1x1x256xf32> to vector<1x4x256xf32>
    %24 = arith.mulf %20, %23 : vector<1x4x256xf32>
    %c0_11 = arith.constant 0 : index
    %c12 = arith.constant 12 : index
    %c0_12 = arith.constant 0 : index
    %25 = vector.load %arg6[%c0_11, %c12, %c0_12] : memref<1x36x256xf32, #tpu.memory_space<vmem>>, vector<1x4x256xf32>
    tpu.vector_store %arg6[%c0_11, %c12, %c0_12], %24 {strides = array<i32>} : memref<1x36x256xf32, #tpu.memory_space<vmem>>, vector<1x4x256xf32>,
    %c0_13 = arith.constant 0 : index
    %c16 = arith.constant 16 : index
    %c0_14 = arith.constant 0 : index
    %26 = vector.load %arg6[%c0_13, %c16, %c0_14] : memref<1x36x256xf32, #tpu.memory_space<vmem>>, vector<1x4x256xf32>
    tpu.vector_store %arg6[%c0_13, %c16, %c0_14], %0 {strides = array<i32>} : memref<1x36x256xf32, #tpu.memory_space<vmem>>, vector<1x4x256xf32>,
    %c255_i32 = arith.constant 255 : i32
    %27 = tpu.dynamic_rotate %0 by %c255_i32 dim 2 : vector<1x4x256xf32>, i32 -> vector<1x4x256xf32>
    %28 = vector.extract_strided_slice %1 {offsets = [5, 0], sizes = [1, 256], strides = [1, 1]} : vector<9x256xf32> to vector<1x256xf32>
    %29 = vector.shape_cast %28 : vector<1x256xf32> to vector<1x1x256xf32>
    %30 = vector.broadcast %29 : vector<1x1x256xf32> to vector<1x4x256xf32>
    %31 = arith.mulf %27, %30 : vector<1x4x256xf32>
    %c0_15 = arith.constant 0 : index
    %c20 = arith.constant 20 : index
    %c0_16 = arith.constant 0 : index
    %32 = vector.load %arg6[%c0_15, %c20, %c0_16] : memref<1x36x256xf32, #tpu.memory_space<vmem>>, vector<1x4x256xf32>
    tpu.vector_store %arg6[%c0_15, %c20, %c0_16], %31 {strides = array<i32>} : memref<1x36x256xf32, #tpu.memory_space<vmem>>, vector<1x4x256xf32>,
    %c241_i32 = arith.constant 241 : i32
    %33 = tpu.dynamic_rotate %0 by %c241_i32 dim 2 : vector<1x4x256xf32>, i32 -> vector<1x4x256xf32>
    %34 = vector.extract_strided_slice %1 {offsets = [6, 0], sizes = [1, 256], strides = [1, 1]} : vector<9x256xf32> to vector<1x256xf32>
    %35 = vector.shape_cast %34 : vector<1x256xf32> to vector<1x1x256xf32>
    %36 = vector.broadcast %35 : vector<1x1x256xf32> to vector<1x4x256xf32>
    %37 = arith.mulf %33, %36 : vector<1x4x256xf32>
    %c0_17 = arith.constant 0 : index
    %c24 = arith.constant 24 : index
    %c0_18 = arith.constant 0 : index
    %38 = vector.load %arg6[%c0_17, %c24, %c0_18] : memref<1x36x256xf32, #tpu.memory_space<vmem>>, vector<1x4x256xf32>
    tpu.vector_store %arg6[%c0_17, %c24, %c0_18], %37 {strides = array<i32>} : memref<1x36x256xf32, #tpu.memory_space<vmem>>, vector<1x4x256xf32>,
    %c240_i32 = arith.constant 240 : i32
    %39 = tpu.dynamic_rotate %0 by %c240_i32 dim 2 : vector<1x4x256xf32>, i32 -> vector<1x4x256xf32>
    %40 = vector.extract_strided_slice %1 {offsets = [7, 0], sizes = [1, 256], strides = [1, 1]} : vector<9x256xf32> to vector<1x256xf32>
    %41 = vector.shape_cast %40 : vector<1x256xf32> to vector<1x1x256xf32>
    %42 = vector.broadcast %41 : vector<1x1x256xf32> to vector<1x4x256xf32>
    %43 = arith.mulf %39, %42 : vector<1x4x256xf32>
    %c0_19 = arith.constant 0 : index
    %c28 = arith.constant 28 : index
    %c0_20 = arith.constant 0 : index
    %44 = vector.load %arg6[%c0_19, %c28, %c0_20] : memref<1x36x256xf32, #tpu.memory_space<vmem>>, vector<1x4x256xf32>
    tpu.vector_store %arg6[%c0_19, %c28, %c0_20], %43 {strides = array<i32>} : memref<1x36x256xf32, #tpu.memory_space<vmem>>, vector<1x4x256xf32>,
    %c239_i32 = arith.constant 239 : i32
    %45 = tpu.dynamic_rotate %0 by %c239_i32 dim 2 : vector<1x4x256xf32>, i32 -> vector<1x4x256xf32>
    %46 = vector.extract_strided_slice %1 {offsets = [8, 0], sizes = [1, 256], strides = [1, 1]} : vector<9x256xf32> to vector<1x256xf32>
    %47 = vector.shape_cast %46 : vector<1x256xf32> to vector<1x1x256xf32>
    %48 = vector.broadcast %47 : vector<1x1x256xf32> to vector<1x4x256xf32>
    %49 = arith.mulf %45, %48 : vector<1x4x256xf32>
    %c0_21 = arith.constant 0 : index
    %c32 = arith.constant 32 : index
    %c0_22 = arith.constant 0 : index
    %50 = vector.load %arg6[%c0_21, %c32, %c0_22] : memref<1x36x256xf32, #tpu.memory_space<vmem>>, vector<1x4x256xf32>
    tpu.vector_store %arg6[%c0_21, %c32, %c0_22], %49 {strides = array<i32>} : memref<1x36x256xf32, #tpu.memory_space<vmem>>, vector<1x4x256xf32>,
    %c0_23 = arith.constant 0 : index
    %c0_24 = arith.constant 0 : index
    %51 = vector.load %arg2[%c0_23, %c0_24] : memref<8x36xf32, #tpu.memory_space<vmem>>, vector<8x36xf32>
    %c0_25 = arith.constant 0 : index
    %c0_26 = arith.constant 0 : index
    %c0_27 = arith.constant 0 : index
    %52 = vector.load %arg6[%c0_25, %c0_26, %c0_27] : memref<1x36x256xf32, #tpu.memory_space<vmem>>, vector<1x36x256xf32>
    %53 = vector.shape_cast %52 : vector<1x36x256xf32> to vector<36x256xf32>
    %cst = arith.constant dense<0.000000e+00> : vector<8x256xf32>
    %54 = tpu.matmul %51, %53, %cst {dimension_numbers = #tpu.dot_dimension_numbers<[1], [0], [0], [1], [0, 0, 1, 1], [], []>} : vector<8x36xf32>, vector<36x256xf32>, vector<8x256xf32> -> vector<8x256xf32>
    %cst_28 = arith.constant dense<0.000000e+00> : vector<8xf32>
    %55 = vector.multi_reduction <add>, %54, %cst_28 [1] : vector<8x256xf32> to vector<8xf32>
    %56 = vector.shape_cast %55 : vector<8xf32> to vector<8x1xf32>
    %c0_29 = arith.constant 0 : index
    %c0_30 = arith.constant 0 : index
    %c0_31 = arith.constant 0 : index
    %57 = vector.load %arg4[%c0_29, %c0_30, %c0_31] : memref<1x8x1xf32, #tpu.memory_space<vmem>>, vector<1x8x1xf32>
    %58 = vector.shape_cast %57 : vector<1x8x1xf32> to vector<8x1xf32>
    %59 = vector.shape_cast %56 : vector<8x1xf32> to vector<1x8x1xf32>
    tpu.vector_store %arg4[%c0_29, %c0_30, %c0_31], %59 {strides = array<i32>} : memref<1x8x1xf32, #tpu.memory_space<vmem>>, vector<1x8x1xf32>,
    %60 = arith.mulf %54, %54 : vector<8x256xf32>
    %cst_32 = arith.constant dense<0.000000e+00> : vector<8xf32>
    %61 = vector.multi_reduction <add>, %60, %cst_32 [1] : vector<8x256xf32> to vector<8xf32>
    %62 = vector.shape_cast %61 : vector<8xf32> to vector<8x1xf32>
    %c0_33 = arith.constant 0 : index
    %c0_34 = arith.constant 0 : index
    %c0_35 = arith.constant 0 : index
    %63 = vector.load %arg5[%c0_33, %c0_34, %c0_35] : memref<1x8x1xf32, #tpu.memory_space<vmem>>, vector<1x8x1xf32>
    %64 = vector.shape_cast %63 : vector<1x8x1xf32> to vector<8x1xf32>
    %65 = vector.shape_cast %62 : vector<8x1xf32> to vector<1x8x1xf32>
    tpu.vector_store %arg5[%c0_33, %c0_34, %c0_35], %65 {strides = array<i32>} : memref<1x8x1xf32, #tpu.memory_space<vmem>>, vector<1x8x1xf32>,
    return
  }
  func.func @transform_0(%arg0: i32) -> (i32, i32, i32) {
    %c0_i32 = arith.constant 0 : i32
    %c0_i32_0 = arith.constant 0 : i32
    %c0_i32_1 = arith.constant 0 : i32
    return %arg0, %c0_i32, %c0_i32_0 : i32, i32, i32
  }
  func.func @transform_1(%arg0: i32) -> (i32, i32) {
    %c0_i32 = arith.constant 0 : i32
    %c0_i32_0 = arith.constant 0 : i32
    %c0_i32_1 = arith.constant 0 : i32
    return %c0_i32, %c0_i32_0 : i32, i32
  }
  func.func @transform_2(%arg0: i32) -> (i32, i32) {
    %c0_i32 = arith.constant 0 : i32
    %c0_i32_0 = arith.constant 0 : i32
    %c0_i32_1 = arith.constant 0 : i32
    return %c0_i32, %c0_i32_0 : i32, i32
  }
  func.func @transform_3(%arg0: i32) -> (i32, i32, i32) {
    %c0_i32 = arith.constant 0 : i32
    %c0_i32_0 = arith.constant 0 : i32
    %c0_i32_1 = arith.constant 0 : i32
    return %arg0, %c0_i32, %c0_i32_0 : i32, i32, i32
  }
  func.func @transform_4(%arg0: i32) -> (i32, i32, i32) {
    %c0_i32 = arith.constant 0 : i32
    %c0_i32_0 = arith.constant 0 : i32
    %c0_i32_1 = arith.constant 0 : i32
    return %arg0, %c0_i32, %c0_i32_0 : i32, i32, i32
  }
}

module attributes {stable_mosaic.version = 11 : i64} {
  func.func @fwd_kernel(%arg0: i32, %arg1: memref<1x4x256xf32, #tpu.memory_space<vmem>>, %arg2: memref<8x36xf32, #tpu.memory_space<vmem>>, %arg3: memref<9x256xf32, #tpu.memory_space<vmem>>, %arg4: memref<8x1xf32, #tpu.memory_space<vmem>>, %arg5: memref<8x1xf32, #tpu.memory_space<vmem>>, %arg6: memref<1x8x256xbf16, #tpu.memory_space<vmem>>, %arg7: memref<1x36x256xf32, #tpu.memory_space<vmem>>) attributes {dimension_semantics = [#tpu.dimension_semantics<parallel>], iteration_bounds = array<i64: 2>, scalar_prefetch = 0 : i64, scratch_operands = 1 : i64, tpu.core_type = #tpu.core_type<tc>, window_params = [{transform_indices = @transform_0, window_bounds = array<i64: 1, 4, 256>}, {pipeline_mode = #tpu.pipeline_mode<synchronous>, transform_indices = @transform_1, window_bounds = array<i64: 8, 36>}, {pipeline_mode = #tpu.pipeline_mode<synchronous>, transform_indices = @transform_2, window_bounds = array<i64: 9, 256>}, {pipeline_mode = #tpu.pipeline_mode<synchronous>, transform_indices = @transform_3, window_bounds = array<i64: 8, 1>}, {pipeline_mode = #tpu.pipeline_mode<synchronous>, transform_indices = @transform_4, window_bounds = array<i64: 8, 1>}, {transform_indices = @transform_5, window_bounds = array<i64: 1, 8, 256>}]} {
    %c0 = arith.constant 0 : index
    %c0_0 = arith.constant 0 : index
    %c0_1 = arith.constant 0 : index
    %0 = vector.load %arg1[%c0, %c0_0, %c0_1] : memref<1x4x256xf32, #tpu.memory_space<vmem>>, vector<1x4x256xf32>
    %c0_2 = arith.constant 0 : index
    %c0_3 = arith.constant 0 : index
    %1 = vector.load %arg3[%c0_2, %c0_3] : memref<9x256xf32, #tpu.memory_space<vmem>>, vector<9x256xf32>
    %c17_i32 = arith.constant 17 : i32
    %2 = tpu.dynamic_rotate %0 by %c17_i32 dim 2 : vector<1x4x256xf32>, i32 -> vector<1x4x256xf32>
    %3 = vector.extract_strided_slice %1 {offsets = [0, 0], sizes = [1, 256], strides = [1, 1]} : vector<9x256xf32> to vector<1x256xf32>
    %4 = vector.shape_cast %3 : vector<1x256xf32> to vector<1x1x256xf32>
    %5 = vector.broadcast %4 : vector<1x1x256xf32> to vector<1x4x256xf32>
    %6 = arith.mulf %2, %5 : vector<1x4x256xf32>
    %c0_4 = arith.constant 0 : index
    %c0_5 = arith.constant 0 : index
    %c0_6 = arith.constant 0 : index
    %7 = vector.load %arg7[%c0_4, %c0_5, %c0_6] : memref<1x36x256xf32, #tpu.memory_space<vmem>>, vector<1x4x256xf32>
    tpu.vector_store %arg7[%c0_4, %c0_5, %c0_6], %6 {strides = array<i32>} : memref<1x36x256xf32, #tpu.memory_space<vmem>>, vector<1x4x256xf32>,
    %c16_i32 = arith.constant 16 : i32
    %8 = tpu.dynamic_rotate %0 by %c16_i32 dim 2 : vector<1x4x256xf32>, i32 -> vector<1x4x256xf32>
    %9 = vector.extract_strided_slice %1 {offsets = [1, 0], sizes = [1, 256], strides = [1, 1]} : vector<9x256xf32> to vector<1x256xf32>
    %10 = vector.shape_cast %9 : vector<1x256xf32> to vector<1x1x256xf32>
    %11 = vector.broadcast %10 : vector<1x1x256xf32> to vector<1x4x256xf32>
    %12 = arith.mulf %8, %11 : vector<1x4x256xf32>
    %c0_7 = arith.constant 0 : index
    %c4 = arith.constant 4 : index
    %c0_8 = arith.constant 0 : index
    %13 = vector.load %arg7[%c0_7, %c4, %c0_8] : memref<1x36x256xf32, #tpu.memory_space<vmem>>, vector<1x4x256xf32>
    tpu.vector_store %arg7[%c0_7, %c4, %c0_8], %12 {strides = array<i32>} : memref<1x36x256xf32, #tpu.memory_space<vmem>>, vector<1x4x256xf32>,
    %c15_i32 = arith.constant 15 : i32
    %14 = tpu.dynamic_rotate %0 by %c15_i32 dim 2 : vector<1x4x256xf32>, i32 -> vector<1x4x256xf32>
    %15 = vector.extract_strided_slice %1 {offsets = [2, 0], sizes = [1, 256], strides = [1, 1]} : vector<9x256xf32> to vector<1x256xf32>
    %16 = vector.shape_cast %15 : vector<1x256xf32> to vector<1x1x256xf32>
    %17 = vector.broadcast %16 : vector<1x1x256xf32> to vector<1x4x256xf32>
    %18 = arith.mulf %14, %17 : vector<1x4x256xf32>
    %c0_9 = arith.constant 0 : index
    %c8 = arith.constant 8 : index
    %c0_10 = arith.constant 0 : index
    %19 = vector.load %arg7[%c0_9, %c8, %c0_10] : memref<1x36x256xf32, #tpu.memory_space<vmem>>, vector<1x4x256xf32>
    tpu.vector_store %arg7[%c0_9, %c8, %c0_10], %18 {strides = array<i32>} : memref<1x36x256xf32, #tpu.memory_space<vmem>>, vector<1x4x256xf32>,
    %c1_i32 = arith.constant 1 : i32
    %20 = tpu.dynamic_rotate %0 by %c1_i32 dim 2 : vector<1x4x256xf32>, i32 -> vector<1x4x256xf32>
    %21 = vector.extract_strided_slice %1 {offsets = [3, 0], sizes = [1, 256], strides = [1, 1]} : vector<9x256xf32> to vector<1x256xf32>
    %22 = vector.shape_cast %21 : vector<1x256xf32> to vector<1x1x256xf32>
    %23 = vector.broadcast %22 : vector<1x1x256xf32> to vector<1x4x256xf32>
    %24 = arith.mulf %20, %23 : vector<1x4x256xf32>
    %c0_11 = arith.constant 0 : index
    %c12 = arith.constant 12 : index
    %c0_12 = arith.constant 0 : index
    %25 = vector.load %arg7[%c0_11, %c12, %c0_12] : memref<1x36x256xf32, #tpu.memory_space<vmem>>, vector<1x4x256xf32>
    tpu.vector_store %arg7[%c0_11, %c12, %c0_12], %24 {strides = array<i32>} : memref<1x36x256xf32, #tpu.memory_space<vmem>>, vector<1x4x256xf32>,
    %c0_13 = arith.constant 0 : index
    %c16 = arith.constant 16 : index
    %c0_14 = arith.constant 0 : index
    %26 = vector.load %arg7[%c0_13, %c16, %c0_14] : memref<1x36x256xf32, #tpu.memory_space<vmem>>, vector<1x4x256xf32>
    tpu.vector_store %arg7[%c0_13, %c16, %c0_14], %0 {strides = array<i32>} : memref<1x36x256xf32, #tpu.memory_space<vmem>>, vector<1x4x256xf32>,
    %c255_i32 = arith.constant 255 : i32
    %27 = tpu.dynamic_rotate %0 by %c255_i32 dim 2 : vector<1x4x256xf32>, i32 -> vector<1x4x256xf32>
    %28 = vector.extract_strided_slice %1 {offsets = [5, 0], sizes = [1, 256], strides = [1, 1]} : vector<9x256xf32> to vector<1x256xf32>
    %29 = vector.shape_cast %28 : vector<1x256xf32> to vector<1x1x256xf32>
    %30 = vector.broadcast %29 : vector<1x1x256xf32> to vector<1x4x256xf32>
    %31 = arith.mulf %27, %30 : vector<1x4x256xf32>
    %c0_15 = arith.constant 0 : index
    %c20 = arith.constant 20 : index
    %c0_16 = arith.constant 0 : index
    %32 = vector.load %arg7[%c0_15, %c20, %c0_16] : memref<1x36x256xf32, #tpu.memory_space<vmem>>, vector<1x4x256xf32>
    tpu.vector_store %arg7[%c0_15, %c20, %c0_16], %31 {strides = array<i32>} : memref<1x36x256xf32, #tpu.memory_space<vmem>>, vector<1x4x256xf32>,
    %c241_i32 = arith.constant 241 : i32
    %33 = tpu.dynamic_rotate %0 by %c241_i32 dim 2 : vector<1x4x256xf32>, i32 -> vector<1x4x256xf32>
    %34 = vector.extract_strided_slice %1 {offsets = [6, 0], sizes = [1, 256], strides = [1, 1]} : vector<9x256xf32> to vector<1x256xf32>
    %35 = vector.shape_cast %34 : vector<1x256xf32> to vector<1x1x256xf32>
    %36 = vector.broadcast %35 : vector<1x1x256xf32> to vector<1x4x256xf32>
    %37 = arith.mulf %33, %36 : vector<1x4x256xf32>
    %c0_17 = arith.constant 0 : index
    %c24 = arith.constant 24 : index
    %c0_18 = arith.constant 0 : index
    %38 = vector.load %arg7[%c0_17, %c24, %c0_18] : memref<1x36x256xf32, #tpu.memory_space<vmem>>, vector<1x4x256xf32>
    tpu.vector_store %arg7[%c0_17, %c24, %c0_18], %37 {strides = array<i32>} : memref<1x36x256xf32, #tpu.memory_space<vmem>>, vector<1x4x256xf32>,
    %c240_i32 = arith.constant 240 : i32
    %39 = tpu.dynamic_rotate %0 by %c240_i32 dim 2 : vector<1x4x256xf32>, i32 -> vector<1x4x256xf32>
    %40 = vector.extract_strided_slice %1 {offsets = [7, 0], sizes = [1, 256], strides = [1, 1]} : vector<9x256xf32> to vector<1x256xf32>
    %41 = vector.shape_cast %40 : vector<1x256xf32> to vector<1x1x256xf32>
    %42 = vector.broadcast %41 : vector<1x1x256xf32> to vector<1x4x256xf32>
    %43 = arith.mulf %39, %42 : vector<1x4x256xf32>
    %c0_19 = arith.constant 0 : index
    %c28 = arith.constant 28 : index
    %c0_20 = arith.constant 0 : index
    %44 = vector.load %arg7[%c0_19, %c28, %c0_20] : memref<1x36x256xf32, #tpu.memory_space<vmem>>, vector<1x4x256xf32>
    tpu.vector_store %arg7[%c0_19, %c28, %c0_20], %43 {strides = array<i32>} : memref<1x36x256xf32, #tpu.memory_space<vmem>>, vector<1x4x256xf32>,
    %c239_i32 = arith.constant 239 : i32
    %45 = tpu.dynamic_rotate %0 by %c239_i32 dim 2 : vector<1x4x256xf32>, i32 -> vector<1x4x256xf32>
    %46 = vector.extract_strided_slice %1 {offsets = [8, 0], sizes = [1, 256], strides = [1, 1]} : vector<9x256xf32> to vector<1x256xf32>
    %47 = vector.shape_cast %46 : vector<1x256xf32> to vector<1x1x256xf32>
    %48 = vector.broadcast %47 : vector<1x1x256xf32> to vector<1x4x256xf32>
    %49 = arith.mulf %45, %48 : vector<1x4x256xf32>
    %c0_21 = arith.constant 0 : index
    %c32 = arith.constant 32 : index
    %c0_22 = arith.constant 0 : index
    %50 = vector.load %arg7[%c0_21, %c32, %c0_22] : memref<1x36x256xf32, #tpu.memory_space<vmem>>, vector<1x4x256xf32>
    tpu.vector_store %arg7[%c0_21, %c32, %c0_22], %49 {strides = array<i32>} : memref<1x36x256xf32, #tpu.memory_space<vmem>>, vector<1x4x256xf32>,
    %c0_23 = arith.constant 0 : index
    %c0_24 = arith.constant 0 : index
    %51 = vector.load %arg2[%c0_23, %c0_24] : memref<8x36xf32, #tpu.memory_space<vmem>>, vector<8x36xf32>
    %c0_25 = arith.constant 0 : index
    %c0_26 = arith.constant 0 : index
    %52 = vector.load %arg4[%c0_25, %c0_26] : memref<8x1xf32, #tpu.memory_space<vmem>>, vector<8x1xf32>
    %c0_27 = arith.constant 0 : index
    %c0_28 = arith.constant 0 : index
    %53 = vector.load %arg5[%c0_27, %c0_28] : memref<8x1xf32, #tpu.memory_space<vmem>>, vector<8x1xf32>
    %c0_29 = arith.constant 0 : index
    %c0_30 = arith.constant 0 : index
    %c0_31 = arith.constant 0 : index
    %54 = vector.load %arg7[%c0_29, %c0_30, %c0_31] : memref<1x36x256xf32, #tpu.memory_space<vmem>>, vector<1x36x256xf32>
    %55 = vector.shape_cast %54 : vector<1x36x256xf32> to vector<36x256xf32>
    %cst = arith.constant dense<0.000000e+00> : vector<8x256xf32>
    %56 = tpu.matmul %51, %55, %cst {dimension_numbers = #tpu.dot_dimension_numbers<[1], [0], [0], [1], [0, 0, 1, 1], [], []>} : vector<8x36xf32>, vector<36x256xf32>, vector<8x256xf32> -> vector<8x256xf32>
    %57 = vector.broadcast %52 : vector<8x1xf32> to vector<8x256xf32>
    %58 = arith.mulf %56, %57 : vector<8x256xf32>
    %59 = vector.broadcast %53 : vector<8x1xf32> to vector<8x256xf32>
    %60 = arith.addf %58, %59 : vector<8x256xf32>
    %cst_32 = arith.constant 0.000000e+00 : f32
    %61 = vector.broadcast %cst_32 : f32 to vector<8x256xf32>
    %62 = arith.maximumf %60, %61 : vector<8x256xf32>
    %63 = arith.truncf %62 : vector<8x256xf32> to vector<8x256xbf16>
    %c0_33 = arith.constant 0 : index
    %c0_34 = arith.constant 0 : index
    %c0_35 = arith.constant 0 : index
    %64 = vector.load %arg6[%c0_33, %c0_34, %c0_35] : memref<1x8x256xbf16, #tpu.memory_space<vmem>>, vector<1x8x256xbf16>
    %65 = vector.shape_cast %64 : vector<1x8x256xbf16> to vector<8x256xbf16>
    %66 = vector.shape_cast %63 : vector<8x256xbf16> to vector<1x8x256xbf16>
    tpu.vector_store %arg6[%c0_33, %c0_34, %c0_35], %66 {strides = array<i32>} : memref<1x8x256xbf16, #tpu.memory_space<vmem>>, vector<1x8x256xbf16>,
    return
  }
  func.func @transform_0(%arg0: i32) -> (i32, i32, i32) {
    %c0_i32 = arith.constant 0 : i32
    %c0_i32_0 = arith.constant 0 : i32
    %c0_i32_1 = arith.constant 0 : i32
    return %arg0, %c0_i32, %c0_i32_0 : i32, i32, i32
  }
  func.func @transform_1(%arg0: i32) -> (i32, i32) {
    %c0_i32 = arith.constant 0 : i32
    %c0_i32_0 = arith.constant 0 : i32
    %c0_i32_1 = arith.constant 0 : i32
    return %c0_i32, %c0_i32_0 : i32, i32
  }
  func.func @transform_2(%arg0: i32) -> (i32, i32) {
    %c0_i32 = arith.constant 0 : i32
    %c0_i32_0 = arith.constant 0 : i32
    %c0_i32_1 = arith.constant 0 : i32
    return %c0_i32, %c0_i32_0 : i32, i32
  }
  func.func @transform_3(%arg0: i32) -> (i32, i32) {
    %c0_i32 = arith.constant 0 : i32
    %c0_i32_0 = arith.constant 0 : i32
    %c0_i32_1 = arith.constant 0 : i32
    return %c0_i32, %c0_i32_0 : i32, i32
  }
  func.func @transform_4(%arg0: i32) -> (i32, i32) {
    %c0_i32 = arith.constant 0 : i32
    %c0_i32_0 = arith.constant 0 : i32
    %c0_i32_1 = arith.constant 0 : i32
    return %c0_i32, %c0_i32_0 : i32, i32
  }
  func.func @transform_5(%arg0: i32) -> (i32, i32, i32) {
    %c0_i32 = arith.constant 0 : i32
    %c0_i32_0 = arith.constant 0 : i32
    %c0_i32_1 = arith.constant 0 : i32
    return %arg0, %c0_i32, %c0_i32_0 : i32, i32, i32
  }
}

</mosaic_0001>

<bundles_post_ra>
// kernel: mul.21
= control target key start
LH: loop header
LB: loop body
LE: loop exit
PB: predicated region body
PF: predicated region fallthrough
CT: control target
= control target key end

     0   :  { %s34_s0 = inlined_call_operand.vmem [shape: f32[8,1], index: 0, kind: input, shape index: {}]   ;;  %s35_s1 = inlined_call_operand.vmem [shape: f32[8,1], index: 1, kind: input, shape index: {}]   ;;  %s36_s2 = inlined_call_operand.vmem [shape: f32[8,1], index: 2, kind: output, shape index: {}]  }
   0x1   :  { %v3_v0 = vld [vmem:[%s34_s0] sm:$0xff] }
   0x2   :  { %v4_v1 = vld [vmem:[%s35_s1] sm:$0xff] }
   0x3   :  { %v7_v2 = vmul.f32 %v4_v1, %v3_v0 }
   0x5   :  { %9 = vst [vmem:[%s36_s2] sm:$0xff] %v7_v2 }

// kernel: conv2d_bn_relu.2
= control target key start
LH: loop header
LB: loop body
LE: loop exit
PB: predicated region body
PF: predicated region fallthrough
CT: control target
= control target key end

     0   :  { %s660_s15 = smov 0   ;;  %s759_s0 = inlined_call_operand.vmem [shape: f32[2,4,256], index: 0, kind: input, shape index: {}]   ;;  %s760_s1 = inlined_call_operand.vmem [shape: f32[8,36], index: 1, kind: input, shape index: {}]   ;;  %s761_s2 = inlined_call_operand.vmem [shape: f32[9,256], index: 2, kind: input, shape index: {}]   ;;  %s762_s3 = inlined_call_operand.vmem [shape: f32[2,8,1], index: 3, kind: output, shape index: {0}]   ;;  %s763_s4 = inlined_call_operand.vmem [shape: f32[2,8,1], index: 4, kind: output, shape index: {1}]  }
   0x1 LB: > { %s583_s16 = sadd.s32 4294967295, %s624_s15   ;;  %p587_p0 = scmp.ge.s32.totalorder %s624_s15, 1  ;;  %s624_s15 = sphi %s660_s15, %s15_s15  }
   0x2   : > { %p165_p1 = scmp.lt.s32.totalorder %s624_s15, 3 }
   0x4   : > { %p166_p2 = pnand %p587_p0, %p165_p1 }
   0x5   : > { %p194_p3 = scmp.lt.s32.totalorder (!%p166_p2), %s583_s16, 1  ;;  %s626_s21 = smov (!%p166_p2), 111  }
   0x6   : > { %169 = sbr.rel (%p166_p2) target bundleno = 509 (0x1fd), region = 32  ;;  %s627_s22 = smov (!%p166_p2), 112  }
   0x7   : > { %s628_s23 = smov (!%p166_p2), 127   ;;  %s629_s24 = smov (!%p166_p2), 113  }
   0x8   : > { %s630_s25 = smov (!%p166_p2), 1   ;;  %s631_s26 = smov (!%p166_p2), 16  }
   0x9   : > { %s632_s27 = smov (!%p166_p2), 15   ;;  %s634_s28 = smov (!%p166_p2), 17  }
   0xb   : > { %s765_s16 = smov (!%p194_p3, %s583_s16), 1  ;;  %v633_v2 = vmov 0.0   ;;  %v219_v3 = vlaneseq  ;;  %v683_v9 = vld [vmem:[%s761_s2] sm:$0xff]  ;;  %v688_v10 = vld [vmem:[%s761_s2 + $0x8] sm:$0xff]  ;;  %v592_v12 = vld [vmem:[%s761_s2 + $0x10] ss:$0 sm:$0xff] }
   0xc   : > { %s668_s17 = sshll.u32 %s765_s16, 3  ;;  %481 = vmatprep.mubr.f32.mxu0 %v633_v2  ;;  %v593_v13 = vld [vmem:[%s761_s2 + $0x18] ss:$0 sm:$0xff]  ;;  %vm410_vm4 = vcmask 1043456   ;;  %vm406_vm9 = vcmask 293888   ;;  %vm491_vm10 = vcmask 7168  }
   0xd   : > { %s198_s20 = scalar_lea.vmem %s759_s0, %s668_s17  ;;  %v674_v4 = vshrl.u32 %v219_v3, 7  ;;  %v676_v5 = vand.u32 127, %v219_v3  ;;  %s202_s16 = scalar_lea.vmem %s762_s3, %s668_s17 }
   0xe   : > { %v207_v0 = vld [vmem:[%s198_s20] sm:$0xff]  ;;  %s206_s20 = scalar_lea.vmem %s763_s4, %s668_s17 }
   0xf   : > { %376 = vrot.lane.b32.xlu1 %v207_v0, %s626_s21  ;;  %305 = vst [vmem:[#allocation2 + $0x48] sm:$0xf] %v207_v0  ;;  %351 = vrot.lane.b32.xlu0 %v207_v0, %s627_s22  ;;  %v213_v1 = vcombine.high %v207_v0, %v207_v0  ;;  %v316_v8 = vsub.s32 5, %v674_v4  ;;  %vm380_vm0 = vcmp.lt.s32.totalorder %v676_v5, 111  ;;  %v360_v11 = vsub.s32 7, %v674_v4 }
  0x10   : > { %vm311_vm1 = vcmp.lt.s32.totalorder %v676_v5, 127  ;;  %vm355_vm2 = vcmp.lt.s32.totalorder %v676_v5, 112  ;;  %v341_v16 = vsub.s32 6, %v674_v4  ;;  %vm336_vm3 = vcmp.lt.s32.totalorder %v676_v5, 113 }
  0x11   : > { %306 = vst [vmem:[#allocation2 + $0x28] sm:$0xf] %v213_v1  ;;  %v317_v19 = vrot.slane %v683_v9, %v316_v8  ;;  %v321_v20 = vrot.slane %v688_v10, %v316_v8  ;;  %v361_v23 = vrot.slane %v683_v9, %v360_v11  ;;  %v365_v24 = vrot.slane %v688_v10, %v360_v11 }
  0x12   : > { %v342_v27 = vrot.slane %v683_v9, %v341_v16  ;;  %v346_v28 = vrot.slane %v688_v10, %v341_v16  ;;  %v289_v29 = vsub.s32 3, %v674_v4  ;;  %vm284_vm5 = vcmp.lt.s32.totalorder %v676_v5, 1 }
  0x13   : > { %307 = vrot.lane.b32.xlu0 %v207_v0, %s628_s23  ;;  %378 = vrot.lane.b32.xlu1 %v213_v1, %s626_s21  ;;  %v245_v50 = vsub.s32 1, %v674_v4  ;;  %vm240_vm6 = vcmp.lt.s32.totalorder %v676_v5, 16  ;;  %v270_v57 = vsub.s32 2, %v674_v4  ;;  %vm265_vm7 = vcmp.lt.s32.totalorder %v676_v5, 15 }
  0x14   : > { %v290_v46 = vrot.slane %v683_v9, %v289_v29  ;;  %v294_v49 = vrot.slane %v688_v10, %v289_v29  ;;  %vm221_vm8 = vcmp.lt.s32.totalorder %v676_v5, 17 }
  0x15   : > { %v246_v60 = vrot.slane %v683_v9, %v245_v50  ;;  %v250_v61 = vrot.slane %v688_v10, %v245_v50  ;;  %v275_v11 = vrot.slane %v688_v10, %v270_v57 }
  0x17   : > { %309 = vrot.lane.b32.xlu1 %v213_v1, %s628_s23  ;;  %353 = vrot.lane.b32.xlu0 %v213_v1, %s627_s22 }
  0x1b   : > { %334 = vrot.lane.b32.xlu1 %v213_v1, %s629_s24  ;;  %332 = vrot.lane.b32.xlu0 %v207_v0, %s629_s24 }
  0x1f   : > { %282 = vrot.lane.b32.xlu1 %v213_v1, %s630_s25  ;;  %280 = vrot.lane.b32.xlu0 %v207_v0, %s630_s25 }
  0x23   : > { %238 = vrot.lane.b32.xlu1 %v213_v1, %s631_s26  ;;  %236 = vrot.lane.b32.xlu0 %v207_v0, %s631_s26 }
  0x27   : > { %263 = vrot.lane.b32.xlu1 %v213_v1, %s632_s27  ;;  %261 = vrot.lane.b32.xlu0 %v207_v0, %s632_s27 }
  0x2b   : > { %217 = vrot.lane.b32.xlu1 %v213_v1, %s634_s28  ;;  %215 = vrot.lane.b32.xlu0 %v207_v0, %s634_s28 }
  0x81   : > { %v377_v6 = vpop.permute.xlu1 %376  ;;  %v352_v7 = vpop.permute.xlu0 %351 }
  0x85   : > { %v308_v14 = vpop.permute.xlu0 %307  ;;  %v379_v15 = vpop.permute.xlu1 %378 }
  0x86   : > { %v381_v17 = vsel %vm380_vm0, %v377_v6, %v379_v15  ;;  %v382_v18 = vsel %vm380_vm0, %v379_v15, %v377_v6  ;;  %v271_v6 = vrot.slane %v683_v9, %v270_v57 }
  0x87   : > { %v391_v21 = vmul.f32 %v592_v12, %v381_v17  ;;  %v392_v22 = vmul.f32 %v593_v13, %v382_v18  ;;  %v226_v12 = vsub.s32 0, %v674_v4 }
  0x89   : > { %393 = vst [vmem:[#allocation2 + $0x40] sm:$0xf] %v391_v21  ;;  %394 = vst [vmem:[#allocation2 + $0x38] sm:$0xf] %v392_v22  ;;  %v310_v25 = vpop.permute.xlu1 %309  ;;  %v354_v26 = vpop.permute.xlu0 %353 }
  0x8a   : > { %v312_v30 = vsel %vm311_vm1, %v308_v14, %v310_v25  ;;  %v313_v31 = vsel %vm311_vm1, %v310_v25, %v308_v14  ;;  %v356_v32 = vsel %vm355_vm2, %v352_v7, %v354_v26  ;;  %v357_v33 = vsel %vm355_vm2, %v354_v26, %v352_v7 }
  0x8b   : > { %v322_v34 = vmul.f32 %v317_v19, %v312_v30  ;;  %v323_v35 = vmul.f32 %v321_v20, %v313_v31  ;;  %v366_v36 = vmul.f32 %v361_v23, %v356_v32  ;;  %v367_v37 = vmul.f32 %v365_v24, %v357_v33 }
  0x8c   : > { %v227_v24 = vrot.slane %v683_v9, %v226_v12  ;;  %v231_v25 = vrot.slane %v688_v10, %v226_v12  ;;  %v395_v10 = vld [vmem:[%s760_s1] sm:$0xff] }
  0x8d   : > { %v326_v38 = vrot.slane %v322_v34, 4  ;;  %v327_v39 = vrot.slane %v323_v35, 4  ;;  %v370_v40 = vrot.slane %v366_v36, 4  ;;  %v371_v41 = vrot.slane %v367_v37, 4  ;;  %v335_v42 = vpop.permute.xlu1 %334  ;;  %v333_v43 = vpop.permute.xlu0 %332 }
  0x8e   : > { %v337_v44 = vsel %vm336_vm3, %v333_v43, %v335_v42  ;;  %v338_v45 = vsel %vm336_vm3, %v335_v42, %v333_v43 }
  0x8f   : > { %330 = vst [vmem:[#allocation2 + $0x48] sm:$0xf0] %v326_v38  ;;  %331 = vst [vmem:[#allocation2 + $0x28] sm:$0xf0] %v327_v39  ;;  %v347_v47 = vmul.f32 %v342_v27, %v337_v44  ;;  %v348_v48 = vmul.f32 %v346_v28, %v338_v45 }
  0x90   : > { %374 = vst [vmem:[#allocation2 + $0x8] sm:$0xf0] %v370_v40  ;;  %375 = vst [vmem:[#allocation2 + $0x20] sm:$0xf0] %v371_v41  ;;  %v405_v51 = vld [vmem:[#allocation2 + $0x38] sm:$0xf] }
  0x91   : > { %v404_v52 = vld [vmem:[#allocation2 + $0x40] sm:$0xf]  ;;  %349 = vst [vmem:[#allocation2 + $0x8] sm:$0xf] %v347_v47  ;;  %350 = vst [vmem:[#allocation2 + $0x20] sm:$0xf] %v348_v48  ;;  %594 = vmatprep.subr.msk.mxu0 %vm410_vm4, %v405_v51  ;;  %v283_v53 = vpop.permute.xlu1 %282  ;;  %v281_v54 = vpop.permute.xlu0 %280 }
  0x92   : > { %v285_v55 = vsel %vm284_vm5, %v281_v54, %v283_v53  ;;  %v286_v56 = vsel %vm284_vm5, %v283_v53, %v281_v54  ;;  %595 = vmatpush1.msk.msra.mxu0 %vm410_vm4, %v404_v52 }
  0x93   : > { %v295_v58 = vmul.f32 %v290_v46, %v286_v56  ;;  %v296_v59 = vmul.f32 %v294_v49, %v285_v55 }
  0x95   : > { %v299_v62 = vrot.slane %v295_v58, 4  ;;  %v300_v63 = vrot.slane %v296_v59, 4  ;;  %v239_v0 = vpop.permute.xlu1 %238  ;;  %v237_v1 = vpop.permute.xlu0 %236 }
  0x96   : > { %v241_v2 = vsel %vm240_vm6, %v237_v1, %v239_v0  ;;  %v242_v3 = vsel %vm240_vm6, %v239_v0, %v237_v1  ;;  %v401_v21 = vld [vmem:[#allocation2 + $0x28] sm:$0xff] }
  0x97   : > { %303 = vst [vmem:[#allocation2 + $0x18] sm:$0xf0] %v299_v62  ;;  %304 = vst [vmem:[#allocation2 + $0x10] sm:$0xf0] %v300_v63  ;;  %v251_v7 = vmul.f32 %v246_v60, %v242_v3  ;;  %v252_v8 = vmul.f32 %v250_v61, %v241_v2  ;;  %v400_v23 = vld [vmem:[#allocation2 + $0x48] sm:$0xff] }
  0x98   : > { %v403_v13 = vld [vmem:[#allocation2 + $0x20] sm:$0xff]  ;;  %v402_v14 = vld [vmem:[#allocation2 + $0x8] sm:$0xff] }
  0x99   : > { %v255_v15 = vrot.slane %v251_v7, 4  ;;  %v256_v16 = vrot.slane %v252_v8, 4  ;;  %v264_v17 = vpop.permute.xlu1 %263  ;;  %441 = vmatprep.subr.mxu0 %v403_v13  ;;  %v262_v18 = vpop.permute.xlu0 %261 }
  0x9a   : > { %v266_v19 = vsel %vm265_vm7, %v262_v18, %v264_v17  ;;  %v267_v20 = vsel %vm265_vm7, %v264_v17, %v262_v18  ;;  %442 = vmatpush1.msra.mxu0 %v402_v14 }
  0x9b   : > { %259 = vst [vmem:[#allocation2 + $0x30] sm:$0xf0] %v255_v15  ;;  %260 = vst [vmem:[#allocation2] sm:$0xf0] %v256_v16  ;;  %v276_v4 = vmul.f32 %v271_v6, %v267_v20  ;;  %v277_v22 = vmul.f32 %v275_v11, %v266_v19  ;;  %443 = vmatprep.subr.mxu0 %v401_v21 }
  0x9c   : > { %444 = vmatpush1.msra.mxu0 %v400_v23 }
  0x9d   : > { %278 = vst [vmem:[#allocation2 + $0x18] sm:$0xf] %v276_v4  ;;  %279 = vst [vmem:[#allocation2 + $0x10] sm:$0xf] %v277_v22  ;;  %v218_v26 = vpop.permute.xlu1 %217  ;;  %v216_v27 = vpop.permute.xlu0 %215 }
  0x9e   : > { %v222_v28 = vsel %vm221_vm8, %v216_v27, %v218_v26  ;;  %v223_v29 = vsel %vm221_vm8, %v218_v26, %v216_v27 }
  0x9f   : > { %v232_v30 = vmul.f32 %v227_v24, %v223_v29  ;;  %v233_v31 = vmul.f32 %v231_v25, %v222_v28 }
  0xa1   : > { %234 = vst [vmem:[#allocation2 + $0x30] sm:$0xf] %v232_v30  ;;  %235 = vst [vmem:[#allocation2] sm:$0xf] %v233_v31 }
  0xa4   : > { %v399_v5 = vld [vmem:[#allocation2 + $0x10] sm:$0xff]  ;;  %v398_v32 = vld [vmem:[#allocation2 + $0x18] sm:$0xff] }
  0xa5   : > { %445 = vmatprep.subr.mxu0 %v399_v5 }
  0xa6   : > { %446 = vmatpush1.msra.mxu0 %v398_v32 }
  0xa8   : > { %v397_v33 = vld [vmem:[#allocation2] sm:$0xff]  ;;  %v396_v9 = vld [vmem:[#allocation2 + $0x30] sm:$0xff] }
  0xa9   : > { %447 = vmatprep.subr.mxu0 %v397_v33 }
  0xaa   : > { %448 = vmatpush1.msra.mxu0 %v396_v9 }
  0xab   : > { %596 = vmatmul.mubr.msk.f32.vlgmr.msra.gmra.mxu0 %vm406_vm9, %v395_v10 }
 0x16b   : > { %v483_v34 = vpop.f32.mrf.mxu0 }
 0x16c   : > { %v493_v36 = vmul.f32 %v483_v34, %v483_v34 }
 0x16d   : > { %v485_v35 = vpop.f32.mrf.mxu0 }
 0x16e   : > { %v488_v37 = vadd.f32 %v485_v35, %v483_v34  ;;  %v494_v38 = vmul.f32 %v485_v35, %v485_v35 }
 0x170   : > { %489 = vadd.xlane.f32.xlu0 %v488_v37  ;;  %v495_v39 = vadd.f32 %v494_v38, %v493_v36 }
 0x172   : > { %496 = vadd.xlane.f32.xlu1 %v495_v39 }
 0x1f9   : > { %v490_v40 = vpop.xlane.xlu0 %489 }
 0x1fa   : > { %492 = vst.msk [vmem:[%s202_s16] sm:$0xff] %vm491_vm10, %v490_v40 }
 0x1fb   : > { %v497_v41 = vpop.xlane.xlu1 %496 }
 0x1fc   : > { %498 = vst.msk [vmem:[%s206_s20] sm:$0xff] %vm491_vm10, %v497_v41 }
 0x1fd PF: > { %s15_s15 = sadd.s32 1, %s624_s15  }
 0x1fe   : > { %p12_p4 = scmp.ge.s32.totalorder %s15_s15, 4  }
 0x200   :  { %14 = sbr.rel (!%p12_p4) target bundleno = 1 (0x1), region = 74 }

// kernel: conv2d_bn_relu.3
= control target key start
LH: loop header
LB: loop body
LE: loop exit
PB: predicated region body
PF: predicated region fallthrough
CT: control target
= control target key end

     0   :  { %s677_s18 = smov 0   ;;  %s781_s0 = inlined_call_operand.vmem [shape: f32[2,4,256], index: 0, kind: input, shape index: {}]   ;;  %s782_s1 = inlined_call_operand.vmem [shape: f32[8,36], index: 1, kind: input, shape index: {}]   ;;  %s783_s2 = inlined_call_operand.vmem [shape: f32[9,256], index: 2, kind: input, shape index: {}]   ;;  %s784_s3 = inlined_call_operand.vmem [shape: f32[8,1], index: 3, kind: input, shape index: {}]   ;;  %s785_s4 = inlined_call_operand.vmem [shape: f32[8,1], index: 4, kind: input, shape index: {}]   ;;  %s786_s5 = inlined_call_operand.vmem [shape: bf16[2,8,256], index: 5, kind: output, shape index: {}]  }
   0x1 LB: > { %s588_s19 = sadd.s32 4294967295, %s635_s18   ;;  %p592_p0 = scmp.ge.s32.totalorder %s635_s18, 1  ;;  %s635_s18 = sphi %s677_s18, %s15_s18  }
   0x2   : > { %p187_p1 = scmp.lt.s32.totalorder %s635_s18, 3 }
   0x4   : > { %p188_p2 = pnand %p592_p0, %p187_p1 }
   0x5   : > { %p215_p3 = scmp.lt.s32.totalorder (!%p188_p2), %s588_s19, 1  ;;  %s637_s24 = smov (!%p188_p2), 111  }
   0x6   : > { %191 = sbr.rel (%p188_p2) target bundleno = 375 (0x177), region = 40  ;;  %s638_s25 = smov (!%p188_p2), 112  }
   0x7   : > { %s639_s26 = smov (!%p188_p2), 127   ;;  %s640_s27 = smov (!%p188_p2), 113  }
   0x8   : > { %s641_s28 = smov (!%p188_p2), 1   ;;  %s642_s29 = smov (!%p188_p2), 16  }
   0x9   : > { %s643_s30 = smov (!%p188_p2), 15   ;;  %s645_s6 = smov (!%p188_p2), 17  }
   0xb   : > { %s788_s19 = smov (!%p215_p3, %s588_s19), 1  ;;  %v644_v2 = vmov 0.0   ;;  %v646_v3 = vmov 0   ;;  %v414_v4 = vld [vmem:[%s784_s3] sm:$0xff]  ;;  %v237_v6 = vlaneseq  ;;  %v713_v13 = vld [vmem:[%s783_s2 + $0x8] sm:$0xff]  ;;  %vm430_vm4 = vcmask 1043456  }
   0xc   : > { %s605_s20 = sshll.u32 %s788_s19, 3  ;;  %501 = vmatprep.mubr.f32.mxu0 %v644_v2  ;;  %626 = vset.pattern.permute.xlu0 %v646_v3  ;;  %v415_v5 = vld [vmem:[%s785_s4] sm:$0xff]  ;;  %v597_v15 = vld [vmem:[%s783_s2 + $0x10] ss:$0 sm:$0xff]  ;;  %v598_v16 = vld [vmem:[%s783_s2 + $0x18] ss:$0 sm:$0xff] }
   0xd   : > { %s219_s23 = scalar_lea.vmem %s781_s0, %s605_s20  ;;  %627 = vset.pattern.permute.xlu1 %v646_v3  ;;  %v699_v7 = vshrl.u32 %v237_v6, 7  ;;  %v701_v8 = vand.u32 127, %v237_v6  ;;  %v708_v12 = vld [vmem:[%s783_s2] sm:$0xff]  ;;  %vm426_vm9 = vcmask 293888  }
   0xe   : > { %v225_v0 = vld [vmem:[%s219_s23] sm:$0xff] }
   0xf   : > { %394 = vrot.lane.b32.xlu1 %v225_v0, %s637_s24  ;;  %323 = vst [vmem:[#allocation2 + $0x48] sm:$0xf] %v225_v0  ;;  %369 = vrot.lane.b32.xlu0 %v225_v0, %s638_s25  ;;  %v231_v1 = vcombine.high %v225_v0, %v225_v0  ;;  %v334_v11 = vsub.s32 5, %v699_v7  ;;  %vm398_vm0 = vcmp.lt.s32.totalorder %v701_v8, 111  ;;  %v378_v14 = vsub.s32 7, %v699_v7 }
  0x10   : > { %vm329_vm1 = vcmp.lt.s32.totalorder %v701_v8, 127  ;;  %vm373_vm2 = vcmp.lt.s32.totalorder %v701_v8, 112  ;;  %v359_v19 = vsub.s32 6, %v699_v7  ;;  %vm354_vm3 = vcmp.lt.s32.totalorder %v701_v8, 113 }
  0x11   : > { %324 = vst [vmem:[#allocation2 + $0x28] sm:$0xf] %v231_v1  ;;  %v335_v22 = vrot.slane %v708_v12, %v334_v11  ;;  %v339_v23 = vrot.slane %v713_v13, %v334_v11  ;;  %v379_v26 = vrot.slane %v708_v12, %v378_v14  ;;  %v383_v27 = vrot.slane %v713_v13, %v378_v14 }
  0x12   : > { %v360_v30 = vrot.slane %v708_v12, %v359_v19  ;;  %v364_v31 = vrot.slane %v713_v13, %v359_v19  ;;  %v307_v32 = vsub.s32 3, %v699_v7  ;;  %vm302_vm5 = vcmp.lt.s32.totalorder %v701_v8, 1 }
  0x13   : > { %325 = vrot.lane.b32.xlu0 %v225_v0, %s639_s26  ;;  %396 = vrot.lane.b32.xlu1 %v231_v1, %s637_s24  ;;  %v263_v53 = vsub.s32 1, %v699_v7  ;;  %vm258_vm6 = vcmp.lt.s32.totalorder %v701_v8, 16  ;;  %v288_v60 = vsub.s32 2, %v699_v7  ;;  %vm283_vm7 = vcmp.lt.s32.totalorder %v701_v8, 15 }
  0x14   : > { %v308_v49 = vrot.slane %v708_v12, %v307_v32  ;;  %v312_v52 = vrot.slane %v713_v13, %v307_v32  ;;  %vm239_vm8 = vcmp.lt.s32.totalorder %v701_v8, 17 }
  0x15   : > { %v264_v63 = vrot.slane %v708_v12, %v263_v53  ;;  %v293_v14 = vrot.slane %v713_v13, %v288_v60 }
  0x17   : > { %327 = vrot.lane.b32.xlu1 %v231_v1, %s639_s26  ;;  %371 = vrot.lane.b32.xlu0 %v231_v1, %s638_s25  ;;  %s224_s26 = scalar_lea.vmem %s786_s5, %s605_s20 }
  0x1b   : > { %352 = vrot.lane.b32.xlu1 %v231_v1, %s640_s27  ;;  %350 = vrot.lane.b32.xlu0 %v225_v0, %s640_s27 }
  0x1f   : > { %300 = vrot.lane.b32.xlu1 %v231_v1, %s641_s28  ;;  %298 = vrot.lane.b32.xlu0 %v225_v0, %s641_s28 }
  0x23   : > { %256 = vrot.lane.b32.xlu1 %v231_v1, %s642_s29  ;;  %254 = vrot.lane.b32.xlu0 %v225_v0, %s642_s29 }
  0x27   : > { %281 = vrot.lane.b32.xlu1 %v231_v1, %s643_s30  ;;  %279 = vrot.lane.b32.xlu0 %v225_v0, %s643_s30 }
  0x2b   : > { %235 = vrot.lane.b32.xlu1 %v231_v1, %s645_s6  ;;  %233 = vrot.lane.b32.xlu0 %v225_v0, %s645_s6  ;;  %v268_v0 = vrot.slane %v713_v13, %v263_v53 }
  0x2f   : > { %510 = vperm.xlu0 %626, %v414_v4   ;;  %517 = vperm.xlu1 %627, %v415_v5  }
  0x81   : > { %v395_v9 = vpop.permute.xlu1 %394  ;;  %v370_v10 = vpop.permute.xlu0 %369 }
  0x85   : > { %v326_v17 = vpop.permute.xlu0 %325  ;;  %v397_v18 = vpop.permute.xlu1 %396 }
  0x86   : > { %v399_v20 = vsel %vm398_vm0, %v395_v9, %v397_v18  ;;  %v400_v21 = vsel %vm398_vm0, %v397_v18, %v395_v9  ;;  %v289_v9 = vrot.slane %v708_v12, %v288_v60 }
  0x87   : > { %v409_v24 = vmul.f32 %v597_v15, %v399_v20  ;;  %v410_v25 = vmul.f32 %v598_v16, %v400_v21  ;;  %v244_v15 = vsub.s32 0, %v699_v7 }
  0x89   : > { %411 = vst [vmem:[#allocation2 + $0x40] sm:$0xf] %v409_v24  ;;  %412 = vst [vmem:[#allocation2 + $0x38] sm:$0xf] %v410_v25  ;;  %v328_v28 = vpop.permute.xlu1 %327  ;;  %v372_v29 = vpop.permute.xlu0 %371 }
  0x8a   : > { %v330_v33 = vsel %vm329_vm1, %v326_v17, %v328_v28  ;;  %v331_v34 = vsel %vm329_vm1, %v328_v28, %v326_v17  ;;  %v374_v35 = vsel %vm373_vm2, %v370_v10, %v372_v29  ;;  %v375_v36 = vsel %vm373_vm2, %v372_v29, %v370_v10 }
  0x8b   : > { %v340_v37 = vmul.f32 %v335_v22, %v330_v33  ;;  %v341_v38 = vmul.f32 %v339_v23, %v331_v34  ;;  %v384_v39 = vmul.f32 %v379_v26, %v374_v35  ;;  %v385_v40 = vmul.f32 %v383_v27, %v375_v36 }
  0x8c   : > { %v245_v27 = vrot.slane %v708_v12, %v244_v15  ;;  %v249_v28 = vrot.slane %v713_v13, %v244_v15  ;;  %v413_v12 = vld [vmem:[%s782_s1] sm:$0xff] }
  0x8d   : > { %v344_v41 = vrot.slane %v340_v37, 4  ;;  %v345_v42 = vrot.slane %v341_v38, 4  ;;  %v388_v43 = vrot.slane %v384_v39, 4  ;;  %v389_v44 = vrot.slane %v385_v40, 4  ;;  %v353_v45 = vpop.permute.xlu1 %352  ;;  %v351_v46 = vpop.permute.xlu0 %350 }
  0x8e   : > { %v355_v47 = vsel %vm354_vm3, %v351_v46, %v353_v45  ;;  %v356_v48 = vsel %vm354_vm3, %v353_v45, %v351_v46 }
  0x8f   : > { %348 = vst [vmem:[#allocation2 + $0x48] sm:$0xf0] %v344_v41  ;;  %349 = vst [vmem:[#allocation2 + $0x28] sm:$0xf0] %v345_v42  ;;  %v365_v50 = vmul.f32 %v360_v30, %v355_v47  ;;  %v366_v51 = vmul.f32 %v364_v31, %v356_v48 }
  0x90   : > { %392 = vst [vmem:[#allocation2 + $0x8] sm:$0xf0] %v388_v43  ;;  %393 = vst [vmem:[#allocation2 + $0x20] sm:$0xf0] %v389_v44  ;;  %v425_v54 = vld [vmem:[#allocation2 + $0x38] sm:$0xf] }
  0x91   : > { %v424_v55 = vld [vmem:[#allocation2 + $0x40] sm:$0xf]  ;;  %367 = vst [vmem:[#allocation2 + $0x8] sm:$0xf] %v365_v50  ;;  %368 = vst [vmem:[#allocation2 + $0x20] sm:$0xf] %v366_v51  ;;  %599 = vmatprep.subr.msk.mxu0 %vm430_vm4, %v425_v54  ;;  %v301_v56 = vpop.permute.xlu1 %300  ;;  %v299_v57 = vpop.permute.xlu0 %298 }
  0x92   : > { %v303_v58 = vsel %vm302_vm5, %v299_v57, %v301_v56  ;;  %v304_v59 = vsel %vm302_vm5, %v301_v56, %v299_v57  ;;  %600 = vmatpush1.msk.msra.mxu0 %vm430_vm4, %v424_v55 }
  0x93   : > { %v313_v61 = vmul.f32 %v308_v49, %v304_v59  ;;  %v314_v62 = vmul.f32 %v312_v52, %v303_v58 }
  0x95   : > { %v317_v1 = vrot.slane %v313_v61, 4  ;;  %v318_v2 = vrot.slane %v314_v62, 4  ;;  %v257_v3 = vpop.permute.xlu1 %256  ;;  %v255_v4 = vpop.permute.xlu0 %254 }
  0x96   : > { %v259_v5 = vsel %vm258_vm6, %v255_v4, %v257_v3  ;;  %v260_v6 = vsel %vm258_vm6, %v257_v3, %v255_v4  ;;  %v421_v24 = vld [vmem:[#allocation2 + $0x28] sm:$0xff] }
  0x97   : > { %321 = vst [vmem:[#allocation2 + $0x18] sm:$0xf0] %v317_v1  ;;  %322 = vst [vmem:[#allocation2 + $0x10] sm:$0xf0] %v318_v2  ;;  %v269_v10 = vmul.f32 %v264_v63, %v260_v6  ;;  %v270_v11 = vmul.f32 %v268_v0, %v259_v5  ;;  %v420_v26 = vld [vmem:[#allocation2 + $0x48] sm:$0xff] }
  0x98   : > { %v423_v16 = vld [vmem:[#allocation2 + $0x20] sm:$0xff]  ;;  %v422_v17 = vld [vmem:[#allocation2 + $0x8] sm:$0xff] }
  0x99   : > { %v273_v18 = vrot.slane %v269_v10, 4  ;;  %v274_v19 = vrot.slane %v270_v11, 4  ;;  %v282_v20 = vpop.permute.xlu1 %281  ;;  %461 = vmatprep.subr.mxu0 %v423_v16  ;;  %v280_v21 = vpop.permute.xlu0 %279 }
  0x9a   : > { %v284_v22 = vsel %vm283_vm7, %v280_v21, %v282_v20  ;;  %v285_v23 = vsel %vm283_vm7, %v282_v20, %v280_v21  ;;  %462 = vmatpush1.msra.mxu0 %v422_v17 }
  0x9b   : > { %277 = vst [vmem:[#allocation2 + $0x30] sm:$0xf0] %v273_v18  ;;  %278 = vst [vmem:[#allocation2] sm:$0xf0] %v274_v19  ;;  %v294_v7 = vmul.f32 %v289_v9, %v285_v23  ;;  %v295_v25 = vmul.f32 %v293_v14, %v284_v22  ;;  %463 = vmatprep.subr.mxu0 %v421_v24 }
  0x9c   : > { %464 = vmatpush1.msra.mxu0 %v420_v26 }
  0x9d   : > { %296 = vst [vmem:[#allocation2 + $0x18] sm:$0xf] %v294_v7  ;;  %297 = vst [vmem:[#allocation2 + $0x10] sm:$0xf] %v295_v25  ;;  %v236_v29 = vpop.permute.xlu1 %235  ;;  %v234_v30 = vpop.permute.xlu0 %233 }
  0x9e   : > { %v240_v31 = vsel %vm239_vm8, %v234_v30, %v236_v29  ;;  %v241_v32 = vsel %vm239_vm8, %v236_v29, %v234_v30 }
  0x9f   : > { %v250_v33 = vmul.f32 %v245_v27, %v241_v32  ;;  %v251_v34 = vmul.f32 %v249_v28, %v240_v31 }
  0xa1   : > { %252 = vst [vmem:[#allocation2 + $0x30] sm:$0xf] %v250_v33  ;;  %253 = vst [vmem:[#allocation2] sm:$0xf] %v251_v34 }
  0xa4   : > { %v419_v8 = vld [vmem:[#allocation2 + $0x10] sm:$0xff]  ;;  %v418_v35 = vld [vmem:[#allocation2 + $0x18] sm:$0xff] }
  0xa5   : > { %465 = vmatprep.subr.mxu0 %v419_v8 }
  0xa6   : > { %466 = vmatpush1.msra.mxu0 %v418_v35 }
  0xa8   : > { %v417_v36 = vld [vmem:[#allocation2] sm:$0xff]  ;;  %v416_v37 = vld [vmem:[#allocation2 + $0x30] sm:$0xff] }
  0xa9   : > { %467 = vmatprep.subr.mxu0 %v417_v36 }
  0xaa   : > { %468 = vmatpush1.msra.mxu0 %v416_v37  ;;  %v511_v13 = vpop.permute.xlu0 %510  ;;  %v518_v39 = vpop.permute.xlu1 %517 }
  0xab   : > { %601 = vmatmul.mubr.msk.f32.vlgmr.msra.gmra.mxu0 %vm426_vm9, %v413_v12 }
 0x16b   : > { %v503_v38 = vpop.f32.mrf.mxu0 }
 0x16c   : > { %v513_v40 = vmul.f32 %v511_v13, %v503_v38 }
 0x16d   : > { %v505_v41 = vpop.f32.mrf.mxu0 }
 0x16e   : > { %v520_v42 = vadd.f32 %v518_v39, %v513_v40  ;;  %v514_v43 = vmul.f32 %v511_v13, %v505_v41 }
 0x170   : > { %v521_v44 = vadd.f32 %v518_v39, %v514_v43  ;;  %v522_v45 = vmax.f32 %v520_v42, 0.0 }
 0x172   : > { %v523_v46 = vmax.f32 %v521_v44, 0.0 }
 0x174   : > { %v607_v47 = vpack.c.bf16 %v523_v46, %v522_v45 }
 0x176   : > { %532 = vst [vmem:[%s224_s26] sm:$0xff] %v607_v47 }
 0x177 PF: > { %s15_s18 = sadd.s32 1, %s635_s18  }
 0x178   : > { %p12_p4 = scmp.ge.s32.totalorder %s15_s18, 4  }
 0x17a   :  { %14 = sbr.rel (!%p12_p4) target bundleno = 1 (0x1), region = 70 }

</bundles_post_ra>
